<compile_context>
chip_gen: v7x
topology: tpu7x:2x2x1
jax: 0.10.0
libtpu: 0.0.40
codegen_flags: <defaults>
</compile_context>

<pallas_src>
import functools
import math

import jax
import jax.numpy as jnp
from jax.experimental import pallas as pl
from jax.experimental.pallas import tpu as pltpu


# ----------------------------------------------------------------------------
# Kernel
# ----------------------------------------------------------------------------
def adain_kernel(x_ref, style_ref, o_ref, *, relu):
    # x_ref block:     (TC, HW)  rows = flattened (batch, channel) groups
    # style_ref block: (TC, 2)   [:, 0] = style mean, [:, 1] = style std
    x = x_ref[...].astype(jnp.float32)                      # (TC, HW)
    hw = x.shape[-1]

    # ---- two-pass moments (accurate like torch's std; extra pass is free) ----
    mu = jnp.sum(x, axis=-1, keepdims=True) * (1.0 / hw)    # (TC, 1)
    d = x - mu                                              # reused for output
    var = jnp.sum(d * d, axis=-1, keepdims=True) * (1.0 / (hw - 1))  # ddof=1
    std = jnp.sqrt(var)

    # Per-row reciprocal only (no full-tile divide). approx=False keeps exact
    # torch numerics; flip to approx=True (EUP vrcp) if tolerance allows.
    inv = pl.reciprocal(std + 1e-7, approx=False)           # (TC, 1)

    style = style_ref[...].astype(jnp.float32)              # (TC, 2)
    sm = style[:, 0:1]                                      # style mean
    ss = style[:, 1:2]                                      # style std
    scale = ss * inv                                        # (TC, 1)

    # ---- single fused pass over the tile ----
    y = d * scale + sm
    if relu:                                                # fused ReLU (Gen)
        y = jnp.maximum(y, 0.0)
    o_ref[...] = y.astype(o_ref.dtype)


# ----------------------------------------------------------------------------
# Tiling helpers
# ----------------------------------------------------------------------------
def _vmem_capacity_bytes():
    try:
        return int(pltpu.get_tpu_info().vmem_capacity_bytes)
    except Exception:
        return 128 << 20  # v5e/v6e physical VMEM


def _pick_row_tile(rows, hw, itemsize, max_tile_elems):
    """Return (row_tile, padded_rows). Prefers a divisor of `rows` (no pad)."""
    # dtype-aware sublane multiple: f32->8, bf16->16, int8/fp8->32
    sub = {4: 8, 2: 16, 1: 32}.get(itemsize, 8)
    cap = max(sub, (max_tile_elems // hw) // sub * sub)

    if rows % sub == 0:
        upper = min(cap, rows)
        if rows >= 2 * sub:
            # keep >=2 grid steps: pipelining + v7x megacore sharding
            upper = min(upper, max(sub, (rows // 2) // sub * sub))
        t = max(upper, sub)
        while t >= sub:
            if rows % t == 0:
                return t, rows                 # exact divisor -> no padding
            t -= sub
        return sub, rows

    # Ragged row count (rows not a multiple of the sublane pack).
    if rows * hw <= 2 * max_tile_elems:
        return rows, rows                      # full-extent single block, no pad
    # Rare fallback: pad rows (padded style rows are zeros -> scale == 0 ->
    # finite outputs, sliced away afterwards; keep that invariant).
    rows_p = (rows + sub - 1) // sub * sub
    t = min(cap, rows_p)
    while t >= sub:
        if rows_p % t == 0:
            return t, rows_p
        t -= sub
    return sub, rows_p


# ----------------------------------------------------------------------------
# XLA path for lane-sparse layers (HW < 128): identical math, no masked stores.
# ----------------------------------------------------------------------------
def _adain_xla(x, style_mean, style_std, *, relu):
    B, C, H, W = x.shape
    xf = x.astype(jnp.float32)
    mu = jnp.mean(xf, axis=(2, 3), keepdims=True)
    var = jnp.var(xf, axis=(2, 3), keepdims=True, ddof=1)
    xn = (xf - mu) / (jnp.sqrt(var) + 1e-7)
    y = xn * style_std.reshape(B, C, 1, 1) + style_mean.reshape(B, C, 1, 1)
    if relu:
        y = jnp.maximum(y, 0.0)
    return y.astype(x.dtype)


# ----------------------------------------------------------------------------
# Wrapper
# ----------------------------------------------------------------------------
def adain(x, w, wm_t, bm, ws_t, bs, *, relu=False):
    """x: (B, C, H, W) NCHW; w: (B, Wch);
    wm_t / ws_t: (Wch, C) = Linear.weight.T; bm / bs: (1, C).
    relu=True fuses the ReLU that follows AdaIN in Gen's blocks."""
    B, C, H, W = x.shape
    HW = H * W
    rows = B * C

    # Style projections: trivial (B,Wch)x(Wch,C) matmuls -> let XLA do them.
    style_mean = (w.astype(jnp.float32) @ wm_t.astype(jnp.float32) + bm).reshape(rows, 1)
    style_std = (w.astype(jnp.float32) @ ws_t.astype(jnp.float32) + bs).reshape(rows, 1)

    if HW < 128:
        # Early 4x4 / 8x8 layers: lane-sparse output -> masked partial stores;
        # tiny tensors anyway, so use the XLA path with identical math.
        return _adain_xla(x, style_mean, style_std, relu=relu)

    assert HW > 1, "AdaIN needs H*W > 1 (unbiased std divides by H*W - 1)"

    # Merge style mean/std into one (rows, 2) input: one BlockSpec, one DMA.
    style = jnp.concatenate([style_mean, style_std], axis=-1)  # (rows, 2) f32

    # Keep x in its native dtype for HBM<->VMEM traffic; cast in-kernel only.
    x2 = x.reshape(rows, HW)
    itemsize = jnp.dtype(x.dtype).itemsize

    # Generation-aware tile budget: ~4 MiB/buffer on 64 MiB-VMEM chips (v7x),
    # ~8 MiB/buffer on 128 MiB chips (v5e/v6e).
    vmem_cap = _vmem_capacity_bytes()
    max_tile_elems = (1 << 20) if vmem_cap <= (64 << 20) else (2 << 20)

    tc, rows_p = _pick_row_tile(rows, HW, itemsize, max_tile_elems)
    if rows_p != rows:
        pad = rows_p - rows
        x2 = jnp.pad(x2, ((0, pad), (0, 0)))
        style = jnp.pad(style, ((0, pad), (0, 0)))  # zero pad -> scale 0, finite

    grid = (rows_p // tc,)

    # Explicit scoped-VMEM budget: 2x double-buffered in + out tiles, f32
    # intermediates (x cast, x-mu), lane-padded style blocks, plus slack.
    tile_native = tc * HW * itemsize
    tile_f32 = tc * HW * 4
    vmem_limit = 4 * tile_native + 4 * tile_f32 + 4 * tc * 128 * 4 + (2 << 20)
    vmem_limit = int(min(max(vmem_limit, 16 << 20), vmem_cap * 3 // 4))

    cost = pl.CostEstimate(
        flops=7 * rows_p * HW,
        transcendentals=2 * rows_p,
        bytes_accessed=2 * rows_p * HW * itemsize + rows_p * 2 * 4,
    )

    out = pl.pallas_call(
        functools.partial(adain_kernel, relu=relu),
        out_shape=jax.ShapeDtypeStruct((rows_p, HW), x.dtype),
        grid=grid,
        in_specs=[
            pl.BlockSpec((tc, HW), lambda r: (r, 0)),   # x rows
            pl.BlockSpec((tc, 2), lambda r: (r, 0)),    # [style mean, style std]
        ],
        out_specs=pl.BlockSpec((tc, HW), lambda r: (r, 0)),
        compiler_params=pltpu.CompilerParams(
            dimension_semantics=("parallel",),
            vmem_limit_bytes=vmem_limit),
        cost_estimate=cost,
    )(x2, style)

    if rows_p != rows:
        out = out[:rows]
    return out.reshape(B, C, H, W)


# ----------------------------------------------------------------------------
# Reference (matches the PyTorch AdaIN forward)
# ----------------------------------------------------------------------------
def adain_reference(x, w, wm_t, bm, ws_t, bs, relu=False):
    mu = jnp.mean(x, axis=(2, 3), keepdims=True)
    var = jnp.var(x, axis=(2, 3), keepdims=True, ddof=1)
    xn = (x - mu) / (jnp.sqrt(var) + 1e-7)
    sm = (w @ wm_t + bm)[:, :, None, None]
    ss = (w @ ws_t + bs)[:, :, None, None]
    y = xn * ss + sm
    return jnp.maximum(y, 0.0) if relu else y


if __name__ == "__main__":
    key = jax.random.PRNGKey(0)
    kx, kw, kwm, kws, kx2, kx3 = jax.random.split(key, 6)

    Wch = 8
    bound = 1.0 / math.sqrt(Wch)

    def make_style_weights(c):
        wm_t = jax.random.uniform(kwm, (Wch, c), jnp.float32, -bound, bound)
        ws_t = jax.random.uniform(kws, (Wch, c), jnp.float32, -bound, bound)
        bm = jnp.zeros((1, c), jnp.float32)   # nn.init.zeros_(self.mean.bias)
        bs = jnp.ones((1, c), jnp.float32)    # nn.init.ones_(self.std.bias)
        return wm_t, bm, ws_t, bs

    ok = True

    # --- 1) kernel path, plain AdaIN (B=2, C=4, 16x16) ---
    B, C, H, W = 2, 4, 16, 16
    x = jax.random.normal(kx, (B, C, H, W), dtype=jnp.float32)
    w = jax.random.normal(kw, (B, Wch), dtype=jnp.float32)
    wm_t, bm, ws_t, bs = make_style_weights(C)
    out = jax.block_until_ready(adain(x, w, wm_t, bm, ws_t, bs))
    ref = adain_reference(x, w, wm_t, bm, ws_t, bs)
    ok &= out.shape == (B, C, H, W)
    ok &= bool(jnp.allclose(out, ref, atol=1e-4, rtol=1e-4))

    # --- 2) kernel path with fused ReLU (as used inside Gen's blocks) ---
    out_r = jax.block_until_ready(adain(x, w, wm_t, bm, ws_t, bs, relu=True))
    ref_r = adain_reference(x, w, wm_t, bm, ws_t, bs, relu=True)
    ok &= bool(jnp.allclose(out_r, ref_r, atol=1e-4, rtol=1e-4))

    # --- 3) multi-step grid / divisor tiling (B=2, C=64, 16x16 -> rows=128) ---
    B2, C2 = 2, 64
    x2 = jax.random.normal(kx2, (B2, C2, H, W), dtype=jnp.float32)
    wm2, bm2, ws2, bs2 = make_style_weights(C2)
    out2 = jax.block_until_ready(adain(x2, w, wm2, bm2, ws2, bs2, relu=True))
    ref2 = adain_reference(x2, w, wm2, bm2, ws2, bs2, relu=True)
    ok &= bool(jnp.allclose(out2, ref2, atol=1e-4, rtol=1e-4))

    # --- 4) lane-sparse early layer (8x8 -> HW=64 < 128) routes to XLA path ---
    x3 = jax.random.normal(kx3, (B, C, 8, 8), dtype=jnp.float32)
    out3 = jax.block_until_ready(adain(x3, w, wm_t, bm, ws_t, bs, relu=True))
    ref3 = adain_reference(x3, w, wm_t, bm, ws_t, bs, relu=True)
    ok &= bool(jnp.allclose(out3, ref3, atol=1e-4, rtol=1e-4))

    assert ok, "mismatch vs reference"
    print("KERNEL_OK")
</pallas_src>

<mosaic_0001>
module attributes {stable_mosaic.version = 11 : i64} {
  func.func @adain_kernel(%arg0: i32, %arg1: memref<8x256xf32, #tpu.memory_space<vmem>>, %arg2: memref<8x2xf32, #tpu.memory_space<vmem>>, %arg3: memref<8x256xf32, #tpu.memory_space<vmem>>) attributes {dimension_semantics = [#tpu.dimension_semantics<parallel>], iteration_bounds = array<i64: 1>, scalar_prefetch = 0 : i64, scratch_operands = 0 : i64, tpu.core_type = #tpu.core_type<tc>, window_params = [{transform_indices = @transform_0, window_bounds = array<i64: 8, 256>}, {transform_indices = @transform_1, window_bounds = array<i64: 8, 2>}, {transform_indices = @transform_2, window_bounds = array<i64: 8, 256>}]} {
    %c0 = arith.constant 0 : index
    %c0_0 = arith.constant 0 : index
    %0 = vector.load %arg1[%c0, %c0_0] : memref<8x256xf32, #tpu.memory_space<vmem>>, vector<8x256xf32>
    %cst = arith.constant dense<0.000000e+00> : vector<8xf32>
    %1 = vector.multi_reduction <add>, %0, %cst [1] : vector<8x256xf32> to vector<8xf32>
    %2 = vector.shape_cast %1 : vector<8xf32> to vector<8x1xf32>
    %cst_1 = arith.constant 3.906250e-03 : f32
    %3 = vector.broadcast %cst_1 : f32 to vector<8x1xf32>
    %4 = arith.mulf %2, %3 : vector<8x1xf32>
    %5 = vector.broadcast %4 : vector<8x1xf32> to vector<8x256xf32>
    %6 = arith.subf %0, %5 : vector<8x256xf32>
    %7 = arith.mulf %6, %6 : vector<8x256xf32>
    %cst_2 = arith.constant dense<0.000000e+00> : vector<8xf32>
    %8 = vector.multi_reduction <add>, %7, %cst_2 [1] : vector<8x256xf32> to vector<8xf32>
    %9 = vector.shape_cast %8 : vector<8xf32> to vector<8x1xf32>
    %cst_3 = arith.constant 0.00392156886 : f32
    %10 = vector.broadcast %cst_3 : f32 to vector<8x1xf32>
    %11 = arith.mulf %9, %10 : vector<8x1xf32>
    %12 = math.sqrt %11 : vector<8x1xf32>
    %cst_4 = arith.constant 1.000000e-07 : f32
    %13 = vector.broadcast %cst_4 : f32 to vector<8x1xf32>
    %14 = arith.addf %12, %13 : vector<8x1xf32>
    %15 = tpu.reciprocal %14 : vector<8x1xf32> -> vector<8x1xf32>
    %c0_5 = arith.constant 0 : index
    %c0_6 = arith.constant 0 : index
    %16 = vector.load %arg2[%c0_5, %c0_6] : memref<8x2xf32, #tpu.memory_space<vmem>>, vector<8x2xf32>
    %17 = vector.extract_strided_slice %16 {offsets = [0, 0], sizes = [8, 1], strides = [1, 1]} : vector<8x2xf32> to vector<8x1xf32>
    %18 = vector.extract_strided_slice %16 {offsets = [0, 1], sizes = [8, 1], strides = [1, 1]} : vector<8x2xf32> to vector<8x1xf32>
    %19 = arith.mulf %18, %15 : vector<8x1xf32>
    %20 = vector.broadcast %19 : vector<8x1xf32> to vector<8x256xf32>
    %21 = arith.mulf %6, %20 : vector<8x256xf32>
    %22 = vector.broadcast %17 : vector<8x1xf32> to vector<8x256xf32>
    %23 = arith.addf %21, %22 : vector<8x256xf32>
    %c0_7 = arith.constant 0 : index
    %c0_8 = arith.constant 0 : index
    %24 = vector.load %arg3[%c0_7, %c0_8] : memref<8x256xf32, #tpu.memory_space<vmem>>, vector<8x256xf32>
    tpu.vector_store %arg3[%c0_7, %c0_8], %23 {strides = array<i32>} : memref<8x256xf32, #tpu.memory_space<vmem>>, vector<8x256xf32>,
    return
  }
  func.func @transform_0(%arg0: i32) -> (i32, i32) {
    %c0_i32 = arith.constant 0 : i32
    %c0_i32_0 = arith.constant 0 : i32
    return %arg0, %c0_i32 : i32, i32
  }
  func.func @transform_1(%arg0: i32) -> (i32, i32) {
    %c0_i32 = arith.constant 0 : i32
    %c0_i32_0 = arith.constant 0 : i32
    return %arg0, %c0_i32 : i32, i32
  }
  func.func @transform_2(%arg0: i32) -> (i32, i32) {
    %c0_i32 = arith.constant 0 : i32
    %c0_i32_0 = arith.constant 0 : i32
    return %arg0, %c0_i32 : i32, i32
  }
}

</mosaic_0001>

<bundles_post_ra>
// kernel: tpu_custom_call.1
= control target key start
LH: loop header
LB: loop body
LE: loop exit
PB: predicated region body
PF: predicated region fallthrough
CT: control target
= control target key end

     0   :  { %7 = vsyncpa [#allocation3], 0  ;;  %s185_s0 = inlined_call_operand.hbm [shape: f32[8,256], index: 0, kind: input, shape index: {}]   ;;  %s186_s1 = inlined_call_operand.vmem [shape: f32[8,2], index: 1, kind: input, shape index: {}]   ;;  %s187_s2 = inlined_call_operand.hbm [shape: f32[8,256], index: 2, kind: output, shape index: {}]  }
   0x1   :  { %8 = vsyncpa [#allocation4], 0  ;;  %s139_s9 = smov [#allocation2]   ;;  %s91_s13 = scalar_lea.hbm %s185_s0, 256 }
   0x2   :  { %s15_s10 = sshll.u32 %s139_s9, 4  ;;  %p92_p0 = scmp.ne.s32.totalorder %s185_s0, %s91_s13  ;;  %s16_s10 = int_to_ptr.vmem [resolvable:$true] %s15_s10 }
   0x3   :  { %p95_p1 = scmp.lt.u32.totalorder %s91_s13, %s185_s0 }
   0x5   :  { %p97_p2 = pnand %p95_p1, %p92_p0 }
   0x7   :  { %100 = shalt.err (!%p97_p2)
}
   0x8   :  { %s101_s18 = scalar_lea.vmem %s16_s10, 256  ;;  %p106_p4 = scmp.lt.s32.totalorder %s16_s10, %s16_s10 }
   0x9   :  { %p102_p3 = scmp.ne.s32.totalorder %s16_s10, %s101_s18  ;;  %p107_p5 = scmp.lt.s32.totalorder %s101_s18, %s101_s18 }
   0xb   :  { %p108_p6 = por %p107_p5, %p106_p4 }
   0xd   :  { %p109_p7 = pnand %p108_p6, %p102_p3 }
   0xf   :  { %112 = shalt.err (!%p109_p7)
}
  0x10   :  { %18 = dma.hbm_to_vmem [thread:$0]  %s185_s0, 256, %s16_s10, [#allocation3]  }
  0x11   :  { %135 = dma.done.wait [#allocation3], 256  }
  0x12   :  { %136 = vsyncadd [#allocation3], 4294967040  ;;  %v24_v0 = vld [vmem:[#allocation2] sm:$0xff]  ;;  %v25_v1 = vld [vmem:[#allocation2 + $0x8] sm:$0xff]  ;;  %v140_v10 = vmov 1   ;;  %v141_v11 = vmov 0  }
  0x13   :  { %v26_v2 = vadd.f32 %v25_v1, %v24_v0  ;;  %84 = vset.pattern.permute.xlu1 %v140_v10  ;;  %86 = vset.pattern.permute.xlu0 %v141_v11  ;;  %v47_v20 = vld [vmem:[%s186_s1] sm:$0xff]  ;;  %s142_s22 = smov [#allocation5]  }
  0x14   :  { %s71_s23 = sshll.u32 %s142_s22, 4  ;;  %s72_s23 = int_to_ptr.vmem [resolvable:$true] %s71_s23 }
  0x15   :  { %27 = vadd.xlane.f32.xlu0 %v26_v2  ;;  %s113_s24 = scalar_lea.vmem %s72_s23, 256  ;;  %p118_p9 = scmp.lt.s32.totalorder %s72_s23, %s72_s23 }
  0x16   :  { %p114_p8 = scmp.ne.s32.totalorder %s72_s23, %s113_s24  ;;  %p119_p10 = scmp.lt.s32.totalorder %s113_s24, %s113_s24 }
  0x18   :  { %p120_p11 = por %p119_p10, %p118_p9 }
  0x1a   :  { %p121_p12 = pnand %p120_p11, %p114_p8 }
  0xa2   :  { %v28_v3 = vpop.xlane.xlu0 %27 }
  0xa3   :  { %v29_v4 = vmul.f32 0.00390625, %v28_v3 }
  0xa5   :  { %v30_v5 = vsub.f32 %v24_v0, %v29_v4  ;;  %v31_v6 = vsub.f32 %v25_v1, %v29_v4 }
  0xa7   :  { %v32_v7 = vmul.f32 %v30_v5, %v30_v5  ;;  %v33_v8 = vmul.f32 %v31_v6, %v31_v6 }
  0xa9   :  { %v34_v9 = vadd.f32 %v33_v8, %v32_v7 }
  0xab   :  { %35 = vadd.xlane.f32.xlu0 %v34_v9 }
 0x138   :  { %v36_v12 = vpop.xlane.xlu0 %35 }
 0x139   :  { %v37_v13 = vmul.f32 0.003921569, %v36_v12 }
 0x13b   :  { %87 = vrsqrt.f32 %v37_v13  ;;  %vm40_vm0 = vcmp.eq.f32.partialorder %v37_v13, inf  ;;  %v43_v16 = vand.u32 2147483648, %v37_v13  ;;  %vm42_vm1 = vcmp.eq.f32.partialorder %v37_v13, 0.0 }
 0x145   :  { %v88_v14 = vpop.eup %87 }
 0x146   :  { %v39_v15 = vmul.f32 %v88_v14, %v37_v13 }
 0x148   :  { %v41_v17 = vsel %vm40_vm0, %v37_v13, %v39_v15 }
 0x149   :  { %v44_v18 = vsel %vm42_vm1, %v43_v16, %v41_v17 }
 0x14a   :  { %v45_v19 = vadd.f32 1e-07, %v44_v18 }
 0x14c   :  { %89 = vrcp.f32 %v45_v19 }
 0x156   :  { %v90_v21 = vpop.eup %89 }
 0x157   :  { %v48_v22 = vmul.f32 %v90_v21, %v47_v20 }
 0x159   :  { %51 = vperm.xlu1 %84, %v48_v22  }
 0x15d   :  { %85 = vset.pattern.permute.xlu1 %v141_v11 }
 0x15e   :  { %58 = vperm.xlu1 %85, %v47_v20  }
 0x1d8   :  { %v52_v23 = vpop.permute.xlu1 %51 }
 0x1d9   :  { %v54_v24 = vmul.f32 %v52_v23, %v30_v5  ;;  %v55_v25 = vmul.f32 %v52_v23, %v31_v6 }
 0x1dd   :  { %v59_v26 = vpop.permute.xlu1 %58 }
 0x1de   :  { %v61_v27 = vadd.f32 %v59_v26, %v54_v24  ;;  %v62_v28 = vadd.f32 %v59_v26, %v55_v25 }
 0x1e0   :  { %63 = vst [vmem:[#allocation5] sm:$0xff] %v61_v27  ;;  %64 = vst [vmem:[#allocation5 + $0x8] sm:$0xff] %v62_v28 }
 0x1e1   :  { %124 = shalt.err (!%p121_p12)
}
 0x1e2   :  { %s125_s26 = scalar_lea.hbm %s187_s2, 256 }
 0x1e3   :  { %p126_p13 = scmp.ne.s32.totalorder %s187_s2, %s125_s26  ;;  %p129_p0 = scmp.lt.u32.totalorder %s125_s26, %s187_s2 }
 0x1e5   :  { %p131_p1 = pnand %p129_p0, %p126_p13 }
 0x1e7   :  { %134 = shalt.err (!%p131_p1)
}
 0x1e8   :  { %74 = dma.vmem_to_hbm [thread:$0]  %s72_s23, 256, %s187_s2, [#allocation4]  }
 0x1e9   :  { %137 = dma.done.wait [#allocation4], 256  }
 0x1ea   :  { %138 = vsyncadd [#allocation4], 4294967040 }
 0x1eb   :  { %78 = vsyncpa [#allocation3], 1 }
 0x1ec   :  { %79 = vsyncpa [#allocation4], 1 }

</bundles_post_ra>
